<compile_context>
chip_gen: v5e
topology: v5e:2x2
jax: 0.10.0
libtpu: 0.0.40
codegen_flags: <defaults>
</compile_context>

<pallas_src>
import jax
import jax.numpy as jnp
from jax.experimental import pallas as pl
from jax.experimental.pallas import tpu as pltpu


def _conv1x1_sub_kernel(x_ref, w_ref, b_ref, o_ref):
    # x_ref: (block_n, 1, block_s)       input tile (C_in == 1)
    # w_ref: (1, C_out, 1)               conv weight column, VMEM-resident
    # b_ref: (1, C_out, 1)               bias with the -1.39 already folded in
    # o_ref: (block_n, C_out, block_s)   NCHW output tile (lane dim = spatial)
    o_ref[...] = (x_ref[...] * w_ref[...] + b_ref[...]).astype(o_ref.dtype)


def conv1x1_sub(x_nchw, weight, bias, *, tile_s=2048, small_limit_bytes=4 << 20):
    """x_nchw: (N, 1, H, W); weight: (C_out, 1); bias: (C_out,)."""
    N, C_in, H, W = x_nchw.shape
    assert C_in == 1, "module fixes Conv2d(in_channels=1, ...)"
    C_out = weight.shape[0]
    S = H * W

    # C_in == 1 -> NCHW is already (N, 1, H*W); free reshape, no transpose.
    x3 = x_nchw.reshape(N, 1, S).astype(jnp.float32)
    w3 = weight.reshape(1, C_out, 1).astype(jnp.float32)
    b3 = (bias.astype(jnp.float32) - 1.39).reshape(1, C_out, 1)

    out_bytes = 4 * N * C_out * S
    if out_bytes <= small_limit_bytes:
        # Small-problem path: one grid step, everything in a single block.
        block_n, block_s = N, S
    else:
        # Tiled path: 1 batch row x a lane-dense spatial tile per step.
        block_n = 1
        block_s = min(S, tile_s)
        if block_s < S:
            # Keep stores 128-lane dense; Pallas masks the ragged last tile.
            block_s = max(128, (block_s // 128) * 128)

    grid = (pl.cdiv(N, block_n), pl.cdiv(S, block_s))

    flops = 2 * N * C_out * S
    bytes_accessed = 4 * (N * S + N * C_out * S + 2 * C_out)

    out3 = pl.pallas_call(
        _conv1x1_sub_kernel,
        out_shape=jax.ShapeDtypeStruct((N, C_out, S), jnp.float32),
        grid_spec=pltpu.PrefetchScalarGridSpec(
            num_scalar_prefetch=0,
            grid=grid,
            in_specs=[
                pl.BlockSpec((block_n, 1, block_s), lambda n, s: (n, 0, s)),
                pl.BlockSpec((1, C_out, 1), lambda n, s: (0, 0, 0)),   # resident
                pl.BlockSpec((1, C_out, 1), lambda n, s: (0, 0, 0)),   # resident
            ],
            out_specs=pl.BlockSpec((block_n, C_out, block_s),
                                   lambda n, s: (n, 0, s)),
        ),
        compiler_params=pltpu.CompilerParams(
            dimension_semantics=("parallel", "parallel"),
            vmem_limit_bytes=32 * 1024 * 1024),
        cost_estimate=pl.CostEstimate(
            flops=flops, transcendentals=0, bytes_accessed=bytes_accessed),
    )(x3, w3, b3)

    # (N, C_out, S) -> (N, C_out, H, W): contiguous reshape, no extra HBM pass.
    return out3.reshape(N, C_out, H, W)


def _reference(x, weight, bias):
    C_out = weight.shape[0]
    return (jnp.einsum("nchw,oc->nohw", x, weight)
            + bias.reshape(1, C_out, 1, 1) - 1.39)


if __name__ == "__main__":
    key = jax.random.PRNGKey(0)
    k_x, k_w, k_b, k_x2 = jax.random.split(key, 4)

    # Module fixes C_in=1, C_out=256; small test shape.
    N, C_in, H, W = 2, 1, 16, 16
    C_out = 256

    x = jax.random.normal(k_x, (N, C_in, H, W), dtype=jnp.float32)
    # Conv2d(1, 256, 1) parameters: weight (256, 1, 1, 1) -> (256, 1), bias (256,)
    weight = jax.random.normal(k_w, (C_out, C_in), dtype=jnp.float32) * 0.1
    bias = jax.random.normal(k_b, (C_out,), dtype=jnp.float32) * 0.1

    # Small-problem (single-step) path.
    out = conv1x1_sub(x, weight, bias)
    jax.block_until_ready(out)
    ref = _reference(x, weight, bias)
    assert out.shape == (N, C_out, H, W)
    assert jnp.allclose(out, ref, atol=1e-4, rtol=1e-4)

    # Tiled path (original spec shape 56x56, includes a ragged last S-tile).
    N2, H2, W2 = 3, 56, 56
    x2 = jax.random.normal(k_x2, (N2, C_in, H2, W2), dtype=jnp.float32)
    out2 = conv1x1_sub(x2, weight, bias)
    jax.block_until_ready(out2)
    ref2 = _reference(x2, weight, bias)
    assert out2.shape == (N2, C_out, H2, W2)
    assert jnp.allclose(out2, ref2, atol=1e-4, rtol=1e-4)

    print("KERNEL_OK")
</pallas_src>

<mosaic_0001>
module attributes {stable_mosaic.version = 11 : i64} {
  func.func @_conv1x1_sub_kernel(%arg0: i32, %arg1: i32, %arg2: memref<2x1x256xf32, #tpu.memory_space<vmem>>, %arg3: memref<1x256x1xf32, #tpu.memory_space<vmem>>, %arg4: memref<1x256x1xf32, #tpu.memory_space<vmem>>, %arg5: memref<2x256x256xf32, #tpu.memory_space<vmem>>) attributes {dimension_semantics = [#tpu.dimension_semantics<parallel>, #tpu.dimension_semantics<parallel>], iteration_bounds = array<i64: 1, 1>, scalar_prefetch = 0 : i64, scratch_operands = 0 : i64, tpu.core_type = #tpu.core_type<tc>, window_params = [{transform_indices = @transform_0, window_bounds = array<i64: 2, 1, 256>}, {pipeline_mode = #tpu.pipeline_mode<synchronous>, transform_indices = @transform_1, window_bounds = array<i64: 1, 256, 1>}, {pipeline_mode = #tpu.pipeline_mode<synchronous>, transform_indices = @transform_2, window_bounds = array<i64: 1, 256, 1>}, {transform_indices = @transform_3, window_bounds = array<i64: 2, 256, 256>}]} {
    %c0 = arith.constant 0 : index
    %c0_0 = arith.constant 0 : index
    %c0_1 = arith.constant 0 : index
    %0 = vector.load %arg2[%c0, %c0_0, %c0_1] : memref<2x1x256xf32, #tpu.memory_space<vmem>>, vector<2x1x256xf32>
    %c0_2 = arith.constant 0 : index
    %c0_3 = arith.constant 0 : index
    %c0_4 = arith.constant 0 : index
    %1 = vector.load %arg3[%c0_2, %c0_3, %c0_4] : memref<1x256x1xf32, #tpu.memory_space<vmem>>, vector<1x256x1xf32>
    %2 = vector.broadcast %0 : vector<2x1x256xf32> to vector<2x256x256xf32>
    %3 = vector.broadcast %1 : vector<1x256x1xf32> to vector<2x256x256xf32>
    %4 = arith.mulf %2, %3 : vector<2x256x256xf32>
    %c0_5 = arith.constant 0 : index
    %c0_6 = arith.constant 0 : index
    %c0_7 = arith.constant 0 : index
    %5 = vector.load %arg4[%c0_5, %c0_6, %c0_7] : memref<1x256x1xf32, #tpu.memory_space<vmem>>, vector<1x256x1xf32>
    %6 = vector.broadcast %5 : vector<1x256x1xf32> to vector<2x256x256xf32>
    %7 = arith.addf %4, %6 : vector<2x256x256xf32>
    %c0_8 = arith.constant 0 : index
    %c0_9 = arith.constant 0 : index
    %c0_10 = arith.constant 0 : index
    %8 = vector.load %arg5[%c0_8, %c0_9, %c0_10] : memref<2x256x256xf32, #tpu.memory_space<vmem>>, vector<2x256x256xf32>
    tpu.vector_store %arg5[%c0_8, %c0_9, %c0_10], %7 {strides = array<i32>} : memref<2x256x256xf32, #tpu.memory_space<vmem>>, vector<2x256x256xf32>,
    return
  }
  func.func @transform_0(%arg0: i32, %arg1: i32) -> (i32, i32, i32) {
    %c0_i32 = arith.constant 0 : i32
    %c0_i32_0 = arith.constant 0 : i32
    return %arg0, %c0_i32, %arg1 : i32, i32, i32
  }
  func.func @transform_1(%arg0: i32, %arg1: i32) -> (i32, i32, i32) {
    %c0_i32 = arith.constant 0 : i32
    %c0_i32_0 = arith.constant 0 : i32
    %c0_i32_1 = arith.constant 0 : i32
    %c0_i32_2 = arith.constant 0 : i32
    return %c0_i32, %c0_i32_0, %c0_i32_1 : i32, i32, i32
  }
  func.func @transform_2(%arg0: i32, %arg1: i32) -> (i32, i32, i32) {
    %c0_i32 = arith.constant 0 : i32
    %c0_i32_0 = arith.constant 0 : i32
    %c0_i32_1 = arith.constant 0 : i32
    %c0_i32_2 = arith.constant 0 : i32
    return %c0_i32, %c0_i32_0, %c0_i32_1 : i32, i32, i32
  }
  func.func @transform_3(%arg0: i32, %arg1: i32) -> (i32, i32, i32) {
    %c0_i32 = arith.constant 0 : i32
    %c0_i32_0 = arith.constant 0 : i32
    return %arg0, %c0_i32, %arg1 : i32, i32, i32
  }
}

</mosaic_0001>

<bundles_post_ra>
// kernel: tpu_custom_call.1
= control target key start
LH: loop header
LB: loop body
LE: loop exit
PB: predicated region body
PF: predicated region fallthrough
CT: control target
= control target key end

     0   :  { %v846_v3 = vmov 0   ;;  %s1399_s0 = inlined_call_operand.vmem [shape: f32[2,1,256], index: 0, kind: input, shape index: {}]   ;;  %s1400_s1 = inlined_call_operand.vmem [shape: f32[1,256,1], index: 1, kind: input, shape index: {}]   ;;  %s1401_s2 = inlined_call_operand.vmem [shape: f32[1,256,1], index: 2, kind: input, shape index: {}]   ;;  %s1402_s3 = inlined_call_operand.hbm [shape: f32[2,256,256], index: 3, kind: output, shape index: {}]  }
   0x1   :  { %v21_v0 = vld [vmem:[%s1400_s1 + $0x20] sm:$0xff]  ;;  %v19_v1 = vld [vmem:[%s1400_s1 + $0x10] sm:$0xff]  ;;  %819 = vset.pattern.permute.xlu2 %v846_v3  ;;  %818 = vset.pattern.permute.xlu1 %v846_v3 }
   0x2   :  { %v17_v2 = vld [vmem:[%s1400_s1] sm:$0xff]  ;;  %817 = vset.pattern.permute.xlu0 %v846_v3  ;;  %81 = vperm.xlu2 %819, %v21_v0  }
   0x3   :  { %71 = vperm.xlu1 %818, %v19_v1   ;;  %61 = vperm.xlu0 %817, %v17_v2  }
   0x4   :  { %8 = vsyncpa [#allocation3], 0  ;;  %v22_v4 = vld [vmem:[%s1400_s1 + $0x28] sm:$0xff]  ;;  %v20_v5 = vld [vmem:[%s1400_s1 + $0x18] sm:$0xff]  ;;  %s801_s8 = sshll.u32 %s1402_s3, 4  ;;  %s848_s9 = smov 256   ;;  %s802_s8 = int_to_ptr.hbm [resolvable:$true] %s801_s8 }
   0x5   :  { %v18_v6 = vld [vmem:[%s1400_s1 + $0x8] sm:$0xff]  ;;  %v25_v7 = vld [vmem:[%s1400_s1 + $0x40] sm:$0xff]  ;;  %v24_v8 = vld [vmem:[%s1400_s1 + $0x38] sm:$0xff]  ;;  %s849_s10 = smov 16  }
   0x6   :  { %v23_v9 = vld [vmem:[%s1400_s1 + $0x30] sm:$0xff]  ;;  %v28_v10 = vld [vmem:[%s1400_s1 + $0x58] sm:$0xff]  ;;  %v26_v12 = vld [vmem:[%s1400_s1 + $0x48] sm:$0xff] }
   0x7   :  { %v27_v11 = vld [vmem:[%s1400_s1 + $0x50] sm:$0xff]  ;;  %v30_v14 = vld [vmem:[%s1400_s1 + $0x68] sm:$0xff]  ;;  %v29_v15 = vld [vmem:[%s1400_s1 + $0x60] sm:$0xff] }
   0x8   :  { %v31_v13 = vld [vmem:[%s1400_s1 + $0x70] sm:$0xff]  ;;  %v34_v16 = vld [vmem:[%s1400_s1 + $0x88] sm:$0xff]  ;;  %v33_v17 = vld [vmem:[%s1400_s1 + $0x80] sm:$0xff] }
   0x9   :  { %v32_v18 = vld [vmem:[%s1400_s1 + $0x78] sm:$0xff]  ;;  %v37_v19 = vld [vmem:[%s1400_s1 + $0xa0] sm:$0xff]  ;;  %v35_v21 = vld [vmem:[%s1400_s1 + $0x90] sm:$0xff] }
   0xa   :  { %86 = vperm.xlu2 %819, %v22_v4   ;;  %v36_v20 = vld [vmem:[%s1400_s1 + $0x98] sm:$0xff]  ;;  %v39_v23 = vld [vmem:[%s1400_s1 + $0xb0] sm:$0xff]  ;;  %v38_v24 = vld [vmem:[%s1400_s1 + $0xa8] sm:$0xff] }
   0xb   :  { %76 = vperm.xlu1 %818, %v20_v5   ;;  %66 = vperm.xlu0 %817, %v18_v6   ;;  %v40_v22 = vld [vmem:[%s1400_s1 + $0xb8] sm:$0xff]  ;;  %v43_v25 = vld [vmem:[%s1400_s1 + $0xd0] sm:$0xff]  ;;  %v42_v26 = vld [vmem:[%s1400_s1 + $0xc8] sm:$0xff] }
   0xc   :  { %v41_v27 = vld [vmem:[%s1400_s1 + $0xc0] sm:$0xff]  ;;  %v46_v28 = vld [vmem:[%s1400_s1 + $0xe8] sm:$0xff]  ;;  %v44_v30 = vld [vmem:[%s1400_s1 + $0xd8] sm:$0xff] }
   0xd   :  { %v45_v29 = vld [vmem:[%s1400_s1 + $0xe0] sm:$0xff]  ;;  %v48_v32 = vld [vmem:[%s1400_s1 + $0xf8] sm:$0xff]  ;;  %v47_v33 = vld [vmem:[%s1400_s1 + $0xf0] sm:$0xff] }
   0xe   :  { %v347_v31 = vld [vmem:[%s1401_s2] sm:$0xff]  ;;  %v350_v34 = vld [vmem:[%s1401_s2 + $0x18] sm:$0xff]  ;;  %v349_v35 = vld [vmem:[%s1401_s2 + $0x10] sm:$0xff] }
   0xf   :  { %v348_v36 = vld [vmem:[%s1401_s2 + $0x8] sm:$0xff]  ;;  %v353_v38 = vld [vmem:[%s1401_s2 + $0x30] sm:$0xff]  ;;  %v351_v40 = vld [vmem:[%s1401_s2 + $0x20] sm:$0xff] }
  0x10   :  { %v352_v39 = vld [vmem:[%s1401_s2 + $0x28] sm:$0xff]  ;;  %v355_v43 = vld [vmem:[%s1401_s2 + $0x40] sm:$0xff]  ;;  %v354_v44 = vld [vmem:[%s1401_s2 + $0x38] sm:$0xff] }
  0x11   :  { %v356_v42 = vld [vmem:[%s1401_s2 + $0x48] sm:$0xff]  ;;  %v359_v46 = vld [vmem:[%s1401_s2 + $0x60] sm:$0xff]  ;;  %v358_v47 = vld [vmem:[%s1401_s2 + $0x58] sm:$0xff] }
  0x12   :  { %101 = vperm.xlu2 %819, %v25_v7   ;;  %v357_v48 = vld [vmem:[%s1401_s2 + $0x50] sm:$0xff]  ;;  %v362_v52 = vld [vmem:[%s1401_s2 + $0x78] sm:$0xff]  ;;  %v360_v54 = vld [vmem:[%s1401_s2 + $0x68] sm:$0xff] }
  0x13   :  { %96 = vperm.xlu1 %818, %v24_v8   ;;  %91 = vperm.xlu0 %817, %v23_v9   ;;  %v361_v53 = vld [vmem:[%s1401_s2 + $0x70] sm:$0xff]  ;;  %v364_v59 = vld [vmem:[%s1401_s2 + $0x88] sm:$0xff]  ;;  %v363_v60 = vld [vmem:[%s1401_s2 + $0x80] sm:$0xff] }
  0x14   :  { %v365_v58 = vld [vmem:[%s1401_s2 + $0x90] sm:$0xff]  ;;  %v368_v0 = vld [vmem:[%s1401_s2 + $0xa8] sm:$0xff]  ;;  %v367_v1 = vld [vmem:[%s1401_s2 + $0xa0] sm:$0xff] }
  0x15   :  { %v366_v2 = vld [vmem:[%s1401_s2 + $0x98] sm:$0xff]  ;;  %v371_v6 = vld [vmem:[%s1401_s2 + $0xc0] sm:$0xff]  ;;  %v369_v8 = vld [vmem:[%s1401_s2 + $0xb0] sm:$0xff] }
  0x16   :  { %v370_v7 = vld [vmem:[%s1401_s2 + $0xb8] sm:$0xff] }
  0x1a   :  { %116 = vperm.xlu2 %819, %v28_v10  }
  0x1b   :  { %111 = vperm.xlu1 %818, %v27_v11   ;;  %106 = vperm.xlu0 %817, %v26_v12   ;;  %v374_v12 = vld [vmem:[%s1401_s2 + $0xd8] sm:$0xff] }
  0x22   :  { %131 = vperm.xlu2 %819, %v31_v13   ;;  %v373_v13 = vld [vmem:[%s1401_s2 + $0xd0] sm:$0xff] }
  0x23   :  { %126 = vperm.xlu1 %818, %v30_v14   ;;  %121 = vperm.xlu0 %817, %v29_v15   ;;  %v372_v14 = vld [vmem:[%s1401_s2 + $0xc8] sm:$0xff] }
  0x2a   :  { %146 = vperm.xlu2 %819, %v34_v16  }
  0x2b   :  { %141 = vperm.xlu1 %818, %v33_v17   ;;  %136 = vperm.xlu0 %817, %v32_v18   ;;  %v377_v18 = vld [vmem:[%s1401_s2 + $0xf0] sm:$0xff] }
  0x32   :  { %161 = vperm.xlu2 %819, %v37_v19   ;;  %v376_v19 = vld [vmem:[%s1401_s2 + $0xe8] sm:$0xff] }
  0x33   :  { %156 = vperm.xlu1 %818, %v36_v20   ;;  %151 = vperm.xlu0 %817, %v35_v21   ;;  %v375_v20 = vld [vmem:[%s1401_s2 + $0xe0] sm:$0xff] }
  0x34   :  { %v15_v21 = vld [vmem:[%s1399_s0] sm:$0x3] }
  0x3a   :  { %176 = vperm.xlu2 %819, %v40_v22   ;;  %v16_v22 = vld [vmem:[%s1399_s0 + $0x2] sm:$0x3]  ;;  %s847_s0 = smov [#allocation2]  }
  0x3b   :  { %171 = vperm.xlu1 %818, %v39_v23   ;;  %166 = vperm.xlu0 %817, %v38_v24  }
  0x42   :  { %191 = vperm.xlu2 %819, %v43_v25  }
  0x43   :  { %186 = vperm.xlu1 %818, %v42_v26   ;;  %181 = vperm.xlu0 %817, %v41_v27   ;;  %v1113_v26 = vperm.slane %v15_v21, 0  ;;  %v1115_v27 = vperm.slane %v15_v21, 1 }
  0x4a   :  { %206 = vperm.xlu2 %819, %v46_v28   ;;  %v1117_v28 = vperm.slane %v16_v22, 0 }
  0x4b   :  { %201 = vperm.xlu1 %818, %v45_v29   ;;  %196 = vperm.xlu0 %817, %v44_v30   ;;  %v1119_v29 = vperm.slane %v16_v22, 1  ;;  %v378_v30 = vld [vmem:[%s1401_s2 + $0xf8] sm:$0xff]  ;;  %s799_s2 = sshll.u32 %s847_s0, 4  ;;  %s800_s2 = int_to_ptr.vmem [resolvable:$true] %s799_s2 }
  0x52   :  { %381 = vperm.xlu2 %819, %v347_v31  }
  0x53   :  { %216 = vperm.xlu1 %818, %v48_v32   ;;  %211 = vperm.xlu0 %817, %v47_v33  }
  0x5a   :  { %396 = vperm.xlu2 %819, %v350_v34  }
  0x5b   :  { %391 = vperm.xlu1 %818, %v349_v35   ;;  %386 = vperm.xlu0 %817, %v348_v36  }
  0x5c   :  { %v978_v37 = vpop.permute.xlu2 %81 }
  0x62   :  { %411 = vperm.xlu2 %819, %v353_v38  }
  0x63   :  { %406 = vperm.xlu1 %818, %v352_v39   ;;  %401 = vperm.xlu0 %817, %v351_v40  }
  0x64   :  { %v989_v41 = vpop.permute.xlu2 %86 }
  0x6a   :  { %426 = vperm.xlu2 %819, %v356_v42  }
  0x6b   :  { %421 = vperm.xlu1 %818, %v355_v43   ;;  %416 = vperm.xlu0 %817, %v354_v44  }
  0x6c   :  { %v1000_v45 = vpop.permute.xlu2 %101 }
  0x72   :  { %441 = vperm.xlu2 %819, %v359_v46  }
  0x73   :  { %436 = vperm.xlu1 %818, %v358_v47   ;;  %431 = vperm.xlu0 %817, %v357_v48  }
  0x74   :  { %v1011_v49 = vpop.permute.xlu2 %116 }
  0x75   :  { %v1013_v50 = vpop.permute.xlu1 %71  ;;  %v1015_v51 = vpop.permute.xlu0 %61 }
  0x76   :  { %v219_v31 = vmul.f32 %v1015_v51, %v1113_v26  ;;  %v220_v32 = vmul.f32 %v1015_v51, %v1115_v27  ;;  %v283_v33 = vmul.f32 %v1015_v51, %v1117_v28  ;;  %v284_v34 = vmul.f32 %v1015_v51, %v1119_v29 }
  0x7a   :  { %456 = vperm.xlu2 %819, %v362_v52  }
  0x7b   :  { %451 = vperm.xlu1 %818, %v361_v53   ;;  %446 = vperm.xlu0 %817, %v360_v54  }
  0x7c   :  { %v1026_v55 = vpop.permute.xlu2 %131 }
  0x7d   :  { %v1028_v56 = vpop.permute.xlu1 %76  ;;  %v1030_v57 = vpop.permute.xlu0 %66 }
  0x7e   :  { %v225_v44 = vmul.f32 %v1028_v56, %v1113_v26  ;;  %v226_v46 = vmul.f32 %v1028_v56, %v1115_v27  ;;  %v289_v47 = vmul.f32 %v1028_v56, %v1117_v28  ;;  %v290_v48 = vmul.f32 %v1028_v56, %v1119_v29 }
  0x82   :  { %471 = vperm.xlu2 %819, %v365_v58  }
  0x83   :  { %466 = vperm.xlu1 %818, %v364_v59   ;;  %461 = vperm.xlu0 %817, %v363_v60  }
  0x84   :  { %v1041_v61 = vpop.permute.xlu2 %146 }
  0x85   :  { %v1043_v62 = vpop.permute.xlu1 %96  ;;  %v1045_v63 = vpop.permute.xlu0 %91 }
  0x86   :  { %v295_v56 = vmul.f32 %v1045_v63, %v1117_v28 }
  0x8a   :  { %486 = vperm.xlu2 %819, %v368_v0   ;;  %v231_v0 = vmul.f32 %v1045_v63, %v1113_v26 }
  0x8b   :  { %481 = vperm.xlu1 %818, %v367_v1   ;;  %476 = vperm.xlu0 %817, %v366_v2   ;;  %v232_v1 = vmul.f32 %v1045_v63, %v1115_v27  ;;  %v296_v2 = vmul.f32 %v1045_v63, %v1119_v29 }
  0x8c   :  { %v1056_v3 = vpop.permute.xlu2 %161 }
  0x8d   :  { %v1058_v4 = vpop.permute.xlu1 %111  ;;  %v1060_v5 = vpop.permute.xlu0 %106 }
  0x8e   :  { %v301_v63 = vmul.f32 %v1060_v5, %v1117_v28  ;;  %v302_v21 = vmul.f32 %v1060_v5, %v1119_v29 }
  0x92   :  { %501 = vperm.xlu2 %819, %v371_v6  }
  0x93   :  { %496 = vperm.xlu1 %818, %v370_v7   ;;  %491 = vperm.xlu0 %817, %v369_v8  }
  0x94   :  { %v1071_v9 = vpop.permute.xlu2 %176 }
  0x95   :  { %v1073_v10 = vpop.permute.xlu1 %126  ;;  %v1075_v11 = vpop.permute.xlu0 %121 }
  0x9a   :  { %516 = vperm.xlu2 %819, %v374_v12  }
  0x9b   :  { %511 = vperm.xlu1 %818, %v373_v13   ;;  %506 = vperm.xlu0 %817, %v372_v14  }
  0x9c   :  { %v1086_v15 = vpop.permute.xlu2 %191 }
  0x9d   :  { %v1088_v16 = vpop.permute.xlu1 %141  ;;  %v1090_v17 = vpop.permute.xlu0 %136 }
  0xa2   :  { %531 = vperm.xlu2 %819, %v377_v18  }
  0xa3   :  { %526 = vperm.xlu1 %818, %v376_v19   ;;  %521 = vperm.xlu0 %817, %v375_v20   ;;  %v237_v19 = vmul.f32 %v1060_v5, %v1113_v26  ;;  %v238_v20 = vmul.f32 %v1060_v5, %v1115_v27  ;;  %v307_v5 = vmul.f32 %v1075_v11, %v1117_v28 }
  0xa4   :  { %v1107_v23 = vpop.permute.xlu2 %206 }
  0xa5   :  { %v1109_v24 = vpop.permute.xlu1 %156  ;;  %v1111_v25 = vpop.permute.xlu0 %151 }
  0xab   :  { %536 = vperm.xlu0 %817, %v378_v30  }
  0xac   :  { %v382_v35 = vpop.permute.xlu2 %381 }
  0xad   :  { %v539_v36 = vadd.f32 %v382_v35, %v219_v31  ;;  %v540_v38 = vadd.f32 %v382_v35, %v220_v32  ;;  %v603_v39 = vadd.f32 %v382_v35, %v283_v33  ;;  %v1132_v40 = vpop.permute.xlu1 %171  ;;  %v1134_v42 = vpop.permute.xlu0 %166  ;;  %v604_v43 = vadd.f32 %v382_v35, %v284_v34 }
  0xaf   :  { %667 = vst [vmem:[#allocation2] sm:$0xff] %v539_v36  ;;  %v243_v36 = vmul.f32 %v1075_v11, %v1113_v26 }
  0xb0   :  { %668 = vst [vmem:[#allocation2 + $0x8] sm:$0xff] %v540_v38  ;;  %v244_v38 = vmul.f32 %v1075_v11, %v1115_v27 }
  0xb1   :  { %731 = vst [vmem:[#allocation2 + $0x200] sm:$0xff] %v603_v39  ;;  %v308_v39 = vmul.f32 %v1075_v11, %v1119_v29  ;;  %v288_v11 = vmul.f32 %v1013_v50, %v1119_v29 }
  0xb2   :  { %732 = vst [vmem:[#allocation2 + $0x208] sm:$0xff] %v604_v43 }
  0xb4   :  { %v397_v51 = vpop.permute.xlu2 %396 }
  0xb5   :  { %v545_v52 = vadd.f32 %v397_v51, %v225_v44  ;;  %v546_v53 = vadd.f32 %v397_v51, %v226_v46  ;;  %v609_v54 = vadd.f32 %v397_v51, %v289_v47  ;;  %v1144_v58 = vpop.permute.xlu1 %186  ;;  %v1146_v59 = vpop.permute.xlu0 %181  ;;  %v610_v60 = vadd.f32 %v397_v51, %v290_v48 }
  0xb6   :  { %v223_v44 = vmul.f32 %v1013_v50, %v1113_v26 }
  0xb7   :  { %673 = vst [vmem:[#allocation2 + $0x30] sm:$0xff] %v545_v52  ;;  %v224_v52 = vmul.f32 %v1013_v50, %v1115_v27 }
  0xb8   :  { %674 = vst [vmem:[#allocation2 + $0x38] sm:$0xff] %v546_v53 }
  0xb9   :  { %737 = vst [vmem:[#allocation2 + $0x230] sm:$0xff] %v609_v54  ;;  %v287_v54 = vmul.f32 %v1013_v50, %v1117_v28  ;;  %v286_v50 = vmul.f32 %v1030_v57, %v1119_v29 }
  0xba   :  { %738 = vst [vmem:[#allocation2 + $0x238] sm:$0xff] %v610_v60 }
  0xbc   :  { %v412_v6 = vpop.permute.xlu2 %411 }
  0xbd   :  { %v551_v7 = vadd.f32 %v412_v6, %v231_v0  ;;  %v552_v8 = vadd.f32 %v412_v6, %v232_v1  ;;  %v615_v12 = vadd.f32 %v412_v6, %v295_v56  ;;  %v1156_v13 = vpop.permute.xlu1 %201  ;;  %v1158_v14 = vpop.permute.xlu0 %196  ;;  %v616_v18 = vadd.f32 %v412_v6, %v296_v2 }
  0xbe   :  { %v221_v56 = vmul.f32 %v1030_v57, %v1113_v26  ;;  %v222_v6 = vmul.f32 %v1030_v57, %v1115_v27 }
  0xbf   :  { %679 = vst [vmem:[#allocation2 + $0x60] sm:$0xff] %v551_v7 }
  0xc0   :  { %680 = vst [vmem:[#allocation2 + $0x68] sm:$0xff] %v552_v8  ;;  %v285_v8 = vmul.f32 %v1030_v57, %v1117_v28  ;;  %v314_v57 = vmul.f32 %v1090_v17, %v1119_v29 }
  0xc1   :  { %743 = vst [vmem:[#allocation2 + $0x260] sm:$0xff] %v615_v12 }
  0xc2   :  { %744 = vst [vmem:[#allocation2 + $0x268] sm:$0xff] %v616_v18 }
  0xc4   :  { %v427_v22 = vpop.permute.xlu2 %426 }
  0xc5   :  { %v557_v30 = vadd.f32 %v427_v22, %v237_v19  ;;  %v558_v31 = vadd.f32 %v427_v22, %v238_v20  ;;  %v621_v32 = vadd.f32 %v427_v22, %v301_v63  ;;  %v1168_v33 = vpop.permute.xlu1 %216  ;;  %v622_v34 = vadd.f32 %v427_v22, %v302_v21  ;;  %v1170_v35 = vpop.permute.xlu0 %211 }
  0xc6   :  { %v249_v20 = vmul.f32 %v1090_v17, %v1113_v26  ;;  %v250_v21 = vmul.f32 %v1090_v17, %v1115_v27 }
  0xc7   :  { %685 = vst [vmem:[#allocation2 + $0x90] sm:$0xff] %v557_v30  ;;  %v313_v30 = vmul.f32 %v1090_v17, %v1117_v28  ;;  %v294_v17 = vmul.f32 %v989_v41, %v1119_v29 }
  0xc8   :  { %686 = vst [vmem:[#allocation2 + $0x98] sm:$0xff] %v558_v31 }
  0xc9   :  { %749 = vst [vmem:[#allocation2 + $0x290] sm:$0xff] %v621_v32 }
  0xca   :  { %750 = vst [vmem:[#allocation2 + $0x298] sm:$0xff] %v622_v34 }
  0xcc   :  { %v442_v43 = vpop.permute.xlu2 %441 }
  0xcd   :  { %v563_v46 = vadd.f32 %v442_v43, %v243_v36  ;;  %v564_v47 = vadd.f32 %v442_v43, %v244_v38  ;;  %v627_v48 = vadd.f32 %v442_v43, %v307_v5  ;;  %v392_v51 = vpop.permute.xlu1 %391  ;;  %v628_v53 = vadd.f32 %v442_v43, %v308_v39  ;;  %v387_v1 = vpop.permute.xlu0 %386 }
  0xce   :  { %v543_v60 = vadd.f32 %v392_v51, %v223_v44  ;;  %v544_v0 = vadd.f32 %v392_v51, %v224_v52  ;;  %v607_v2 = vadd.f32 %v392_v51, %v287_v54  ;;  %v608_v7 = vadd.f32 %v392_v51, %v288_v11 }
  0xcf   :  { %691 = vst [vmem:[#allocation2 + $0xc0] sm:$0xff] %v563_v46  ;;  %v541_v12 = vadd.f32 %v387_v1, %v221_v56  ;;  %v542_v18 = vadd.f32 %v387_v1, %v222_v6  ;;  %v605_v63 = vadd.f32 %v387_v1, %v285_v8  ;;  %v606_v22 = vadd.f32 %v387_v1, %v286_v50 }
  0xd0   :  { %692 = vst [vmem:[#allocation2 + $0xc8] sm:$0xff] %v564_v47  ;;  %v229_v36 = vmul.f32 %v989_v41, %v1113_v26  ;;  %v230_v5 = vmul.f32 %v989_v41, %v1115_v27  ;;  %v293_v44 = vmul.f32 %v989_v41, %v1117_v28  ;;  %v228_v52 = vmul.f32 %v978_v37, %v1115_v27 }
  0xd1   :  { %755 = vst [vmem:[#allocation2 + $0x2c0] sm:$0xff] %v627_v48  ;;  %v227_v48 = vmul.f32 %v978_v37, %v1113_v26  ;;  %v291_v54 = vmul.f32 %v978_v37, %v1117_v28  ;;  %v292_v41 = vmul.f32 %v978_v37, %v1119_v29  ;;  %v255_v1 = vmul.f32 %v1111_v25, %v1113_v26 }
  0xd2   :  { %756 = vst [vmem:[#allocation2 + $0x2c8] sm:$0xff] %v628_v53  ;;  %v320_v37 = vmul.f32 %v1111_v25, %v1119_v29 }
  0xd3   :  { %671 = vst [vmem:[#allocation2 + $0x20] sm:$0xff] %v543_v60 }
  0xd4   :  { %672 = vst [vmem:[#allocation2 + $0x28] sm:$0xff] %v544_v0  ;;  %v457_v19 = vpop.permute.xlu2 %456 }
  0xd5   :  { %735 = vst [vmem:[#allocation2 + $0x220] sm:$0xff] %v607_v2  ;;  %v569_v31 = vadd.f32 %v457_v19, %v249_v20  ;;  %v570_v32 = vadd.f32 %v457_v19, %v250_v21  ;;  %v407_v34 = vpop.permute.xlu1 %406  ;;  %v633_v38 = vadd.f32 %v457_v19, %v313_v30  ;;  %v634_v39 = vadd.f32 %v457_v19, %v314_v57  ;;  %v402_v43 = vpop.permute.xlu0 %401 }
  0xd6   :  { %736 = vst [vmem:[#allocation2 + $0x228] sm:$0xff] %v608_v7  ;;  %v549_v46 = vadd.f32 %v407_v34, %v229_v36  ;;  %v550_v47 = vadd.f32 %v407_v34, %v230_v5  ;;  %v613_v51 = vadd.f32 %v407_v34, %v293_v44  ;;  %v614_v53 = vadd.f32 %v407_v34, %v294_v17 }
  0xd7   :  { %669 = vst [vmem:[#allocation2 + $0x10] sm:$0xff] %v541_v12  ;;  %v547_v60 = vadd.f32 %v402_v43, %v227_v48  ;;  %v548_v11 = vadd.f32 %v402_v43, %v228_v52  ;;  %v611_v56 = vadd.f32 %v402_v43, %v291_v54  ;;  %v256_v2 = vmul.f32 %v1111_v25, %v1115_v27 }
  0xd8   :  { %670 = vst [vmem:[#allocation2 + $0x18] sm:$0xff] %v542_v18  ;;  %v612_v6 = vadd.f32 %v402_v43, %v292_v41  ;;  %v319_v7 = vmul.f32 %v1111_v25, %v1117_v28  ;;  %v235_v19 = vmul.f32 %v1000_v45, %v1113_v26  ;;  %v300_v25 = vmul.f32 %v1000_v45, %v1119_v29 }
  0xd9   :  { %733 = vst [vmem:[#allocation2 + $0x210] sm:$0xff] %v605_v63  ;;  %v236_v63 = vmul.f32 %v1000_v45, %v1115_v27  ;;  %v233_v57 = vmul.f32 %v1043_v62, %v1113_v26  ;;  %v234_v34 = vmul.f32 %v1043_v62, %v1115_v27  ;;  %v261_v44 = vmul.f32 %v1134_v42, %v1113_v26 }
  0xda   :  { %734 = vst [vmem:[#allocation2 + $0x218] sm:$0xff] %v606_v22  ;;  %v299_v22 = vmul.f32 %v1000_v45, %v1117_v28  ;;  %v298_v45 = vmul.f32 %v1043_v62, %v1119_v29  ;;  %v262_v17 = vmul.f32 %v1134_v42, %v1115_v27 }
  0xdb   :  { %697 = vst [vmem:[#allocation2 + $0xf0] sm:$0xff] %v569_v31 }
  0xdc   :  { %698 = vst [vmem:[#allocation2 + $0xf8] sm:$0xff] %v570_v32  ;;  %v472_v0 = vpop.permute.xlu2 %471 }
  0xdd   :  { %761 = vst [vmem:[#allocation2 + $0x2f0] sm:$0xff] %v633_v38  ;;  %v575_v8 = vadd.f32 %v472_v0, %v255_v1  ;;  %v576_v12 = vadd.f32 %v472_v0, %v256_v2  ;;  %v422_v50 = vpop.permute.xlu1 %421  ;;  %v417_v18 = vpop.permute.xlu0 %416  ;;  %v639_v20 = vadd.f32 %v472_v0, %v319_v7  ;;  %v640_v21 = vadd.f32 %v472_v0, %v320_v37 }
  0xde   :  { %762 = vst [vmem:[#allocation2 + $0x2f8] sm:$0xff] %v634_v39  ;;  %v555_v30 = vadd.f32 %v422_v50, %v235_v19  ;;  %v556_v31 = vadd.f32 %v422_v50, %v236_v63  ;;  %v619_v32 = vadd.f32 %v422_v50, %v299_v22  ;;  %v620_v36 = vadd.f32 %v422_v50, %v300_v25 }
  0xdf   :  { %677 = vst [vmem:[#allocation2 + $0x50] sm:$0xff] %v549_v46  ;;  %v297_v38 = vmul.f32 %v1043_v62, %v1117_v28  ;;  %v553_v5 = vadd.f32 %v417_v18, %v233_v57  ;;  %v554_v39 = vadd.f32 %v417_v18, %v234_v34  ;;  %v326_v62 = vmul.f32 %v1134_v42, %v1119_v29 }
  0xe0   :  { %678 = vst [vmem:[#allocation2 + $0x58] sm:$0xff] %v550_v47  ;;  %v618_v47 = vadd.f32 %v417_v18, %v298_v45  ;;  %v305_v1 = vmul.f32 %v1011_v49, %v1117_v28  ;;  %v267_v63 = vmul.f32 %v1146_v59, %v1113_v26  ;;  %v268_v22 = vmul.f32 %v1146_v59, %v1115_v27 }
  0xe1   :  { %741 = vst [vmem:[#allocation2 + $0x250] sm:$0xff] %v613_v51  ;;  %v617_v46 = vadd.f32 %v417_v18, %v297_v38  ;;  %v325_v51 = vmul.f32 %v1134_v42, %v1117_v28  ;;  %v306_v42 = vmul.f32 %v1011_v49, %v1119_v29  ;;  %v332_v57 = vmul.f32 %v1146_v59, %v1119_v29 }
  0xe2   :  { %742 = vst [vmem:[#allocation2 + $0x258] sm:$0xff] %v614_v53  ;;  %v247_v34 = vmul.f32 %v1026_v55, %v1113_v26  ;;  %v248_v38 = vmul.f32 %v1026_v55, %v1115_v27  ;;  %v311_v45 = vmul.f32 %v1026_v55, %v1117_v28 }
  0xe3   :  { %675 = vst [vmem:[#allocation2 + $0x40] sm:$0xff] %v547_v60  ;;  %v241_v60 = vmul.f32 %v1011_v49, %v1113_v26 }
  0xe4   :  { %676 = vst [vmem:[#allocation2 + $0x48] sm:$0xff] %v548_v11  ;;  %v487_v43 = vpop.permute.xlu2 %486  ;;  %v242_v11 = vmul.f32 %v1011_v49, %v1115_v27  ;;  %v304_v49 = vmul.f32 %v1058_v4, %v1119_v29 }
  0xe5   :  { %739 = vst [vmem:[#allocation2 + $0x240] sm:$0xff] %v611_v56  ;;  %v432_v48 = vpop.permute.xlu0 %431  ;;  %v581_v52 = vadd.f32 %v487_v43, %v261_v44  ;;  %v582_v53 = vadd.f32 %v487_v43, %v262_v17  ;;  %v437_v54 = vpop.permute.xlu1 %436  ;;  %v645_v41 = vadd.f32 %v487_v43, %v325_v51  ;;  %v646_v0 = vadd.f32 %v487_v43, %v326_v62 }
  0xe6   :  { %740 = vst [vmem:[#allocation2 + $0x248] sm:$0xff] %v612_v6  ;;  %v561_v56 = vadd.f32 %v437_v54, %v241_v60  ;;  %v562_v2 = vadd.f32 %v437_v54, %v242_v11  ;;  %v239_v6 = vmul.f32 %v1058_v4, %v1113_v26  ;;  %v625_v7 = vadd.f32 %v437_v54, %v305_v1 }
  0xe7   :  { %703 = vst [vmem:[#allocation2 + $0x120] sm:$0xff] %v575_v8  ;;  %v240_v8 = vmul.f32 %v1058_v4, %v1115_v27  ;;  %v626_v37 = vadd.f32 %v437_v54, %v306_v42  ;;  %v245_v44 = vmul.f32 %v1073_v10, %v1113_v26  ;;  %v246_v17 = vmul.f32 %v1073_v10, %v1115_v27 }
  0xe8   :  { %704 = vst [vmem:[#allocation2 + $0x128] sm:$0xff] %v576_v12  ;;  %v303_v12 = vmul.f32 %v1058_v4, %v1117_v28  ;;  %v559_v50 = vadd.f32 %v432_v48, %v239_v6  ;;  %v309_v51 = vmul.f32 %v1073_v10, %v1117_v28  ;;  %v273_v60 = vmul.f32 %v1158_v14, %v1113_v26 }
  0xe9   :  { %767 = vst [vmem:[#allocation2 + $0x320] sm:$0xff] %v639_v20  ;;  %v560_v18 = vadd.f32 %v432_v48, %v240_v8  ;;  %v274_v11 = vmul.f32 %v1158_v14, %v1115_v27  ;;  %v337_v1 = vmul.f32 %v1158_v14, %v1117_v28 }
  0xea   :  { %768 = vst [vmem:[#allocation2 + $0x328] sm:$0xff] %v640_v21  ;;  %v623_v21 = vadd.f32 %v432_v48, %v303_v12 }
  0xeb   :  { %683 = vst [vmem:[#allocation2 + $0x80] sm:$0xff] %v555_v30  ;;  %v624_v30 = vadd.f32 %v432_v48, %v304_v49 }
  0xec   :  { %684 = vst [vmem:[#allocation2 + $0x88] sm:$0xff] %v556_v31  ;;  %v502_v19 = vpop.permute.xlu2 %501  ;;  %v331_v31 = vmul.f32 %v1146_v59, %v1117_v28  ;;  %v312_v59 = vmul.f32 %v1026_v55, %v1119_v29  ;;  %v310_v55 = vmul.f32 %v1073_v10, %v1119_v29  ;;  %v338_v10 = vmul.f32 %v1158_v14, %v1119_v29 }
  0xed   :  { %747 = vst [vmem:[#allocation2 + $0x280] sm:$0xff] %v619_v32  ;;  %v447_v20 = vpop.permute.xlu0 %446  ;;  %v452_v25 = vpop.permute.xlu1 %451  ;;  %v587_v4 = vadd.f32 %v502_v19, %v267_v63  ;;  %v588_v32 = vadd.f32 %v502_v19, %v268_v22  ;;  %v318_v14 = vmul.f32 %v1041_v61, %v1119_v29  ;;  %v315_v22 = vmul.f32 %v1088_v16, %v1117_v28 }
  0xee   :  { %748 = vst [vmem:[#allocation2 + $0x288] sm:$0xff] %v620_v36  ;;  %v651_v36 = vadd.f32 %v502_v19, %v331_v31  ;;  %v568_v43 = vadd.f32 %v452_v25, %v248_v38  ;;  %v566_v62 = vadd.f32 %v447_v20, %v246_v17 }
  0xef   :  { %681 = vst [vmem:[#allocation2 + $0x70] sm:$0xff] %v553_v5  ;;  %v652_v5 = vadd.f32 %v502_v19, %v332_v57  ;;  %v279_v57 = vmul.f32 %v1170_v35, %v1113_v26 }
  0xf0   :  { %682 = vst [vmem:[#allocation2 + $0x78] sm:$0xff] %v554_v39  ;;  %v567_v39 = vadd.f32 %v452_v25, %v247_v34  ;;  %v280_v34 = vmul.f32 %v1170_v35, %v1115_v27 }
  0xf1   :  { %745 = vst [vmem:[#allocation2 + $0x270] sm:$0xff] %v617_v46  ;;  %v631_v46 = vadd.f32 %v452_v25, %v311_v45  ;;  %v259_v45 = vmul.f32 %v1056_v3, %v1113_v26 }
  0xf2   :  { %746 = vst [vmem:[#allocation2 + $0x278] sm:$0xff] %v618_v47  ;;  %v632_v47 = vadd.f32 %v452_v25, %v312_v59  ;;  %v260_v59 = vmul.f32 %v1056_v3, %v1115_v27 }
  0xf3   :  { %709 = vst [vmem:[#allocation2 + $0x150] sm:$0xff] %v581_v52  ;;  %v565_v52 = vadd.f32 %v447_v20, %v245_v44 }
  0xf4   :  { %710 = vst [vmem:[#allocation2 + $0x158] sm:$0xff] %v582_v53  ;;  %v517_v53 = vpop.permute.xlu2 %516 }
  0xf5   :  { %773 = vst [vmem:[#allocation2 + $0x350] sm:$0xff] %v645_v41  ;;  %v462_v48 = vpop.permute.xlu0 %461  ;;  %v467_v54 = vpop.permute.xlu1 %466  ;;  %v629_v41 = vadd.f32 %v447_v20, %v309_v51  ;;  %v594_v42 = vadd.f32 %v517_v53, %v274_v11  ;;  %v657_v6 = vadd.f32 %v517_v53, %v337_v1  ;;  %v658_v8 = vadd.f32 %v517_v53, %v338_v10 }
  0xf6   :  { %774 = vst [vmem:[#allocation2 + $0x358] sm:$0xff] %v646_v0  ;;  %v630_v0 = vadd.f32 %v447_v20, %v310_v55  ;;  %v252_v20 = vmul.f32 %v1088_v16, %v1115_v27  ;;  %v638_v63 = vadd.f32 %v467_v54, %v318_v14  ;;  %v257_v51 = vmul.f32 %v1109_v24, %v1113_v26 }
  0xf7   :  { %689 = vst [vmem:[#allocation2 + $0xb0] sm:$0xff] %v561_v56  ;;  %v593_v56 = vadd.f32 %v517_v53, %v273_v60  ;;  %v258_v55 = vmul.f32 %v1109_v24, %v1115_v27  ;;  %v321_v53 = vmul.f32 %v1109_v24, %v1117_v28  ;;  %v327_v14 = vmul.f32 %v1132_v40, %v1117_v28 }
  0xf8   :  { %690 = vst [vmem:[#allocation2 + $0xb8] sm:$0xff] %v562_v2  ;;  %v253_v2 = vmul.f32 %v1041_v61, %v1113_v26  ;;  %v572_v25 = vadd.f32 %v462_v48, %v252_v20  ;;  %v272_v20 = vmul.f32 %v1086_v15, %v1115_v27 }
  0xf9   :  { %753 = vst [vmem:[#allocation2 + $0x2b0] sm:$0xff] %v625_v7  ;;  %v254_v7 = vmul.f32 %v1041_v61, %v1115_v27 }
  0xfa   :  { %754 = vst [vmem:[#allocation2 + $0x2b8] sm:$0xff] %v626_v37  ;;  %v317_v37 = vmul.f32 %v1041_v61, %v1117_v28  ;;  %v573_v12 = vadd.f32 %v467_v54, %v253_v2  ;;  %v316_v61 = vmul.f32 %v1088_v16, %v1119_v29 }
  0xfb   :  { %687 = vst [vmem:[#allocation2 + $0xa0] sm:$0xff] %v559_v50  ;;  %v574_v50 = vadd.f32 %v467_v54, %v254_v7 }
  0xfc   :  { %688 = vst [vmem:[#allocation2 + $0xa8] sm:$0xff] %v560_v18  ;;  %v251_v18 = vmul.f32 %v1088_v16, %v1113_v26  ;;  %v637_v19 = vadd.f32 %v467_v54, %v317_v37  ;;  %v532_v31 = vpop.permute.xlu2 %531  ;;  %v344_v16 = vmul.f32 %v1170_v35, %v1119_v29 }
  0xfd   :  { %751 = vst [vmem:[#allocation2 + $0x2a0] sm:$0xff] %v623_v21  ;;  %v477_v49 = vpop.permute.xlu0 %476  ;;  %v482_v21 = vpop.permute.xlu1 %481  ;;  %v599_v38 = vadd.f32 %v532_v31, %v279_v57 }
  0xfe   :  { %752 = vst [vmem:[#allocation2 + $0x2a8] sm:$0xff] %v624_v30  ;;  %v571_v30 = vadd.f32 %v462_v48, %v251_v18  ;;  %v579_v17 = vadd.f32 %v482_v21, %v259_v45  ;;  %v577_v54 = vadd.f32 %v477_v49, %v257_v51  ;;  %v578_v60 = vadd.f32 %v477_v49, %v258_v55 }
  0xff   :  { %715 = vst [vmem:[#allocation2 + $0x180] sm:$0xff] %v587_v4  ;;  %v635_v4 = vadd.f32 %v462_v48, %v315_v22  ;;  %v641_v11 = vadd.f32 %v477_v49, %v321_v53  ;;  %v271_v18 = vmul.f32 %v1086_v15, %v1113_v26  ;;  %v281_v53 = vmul.f32 %v1168_v33, %v1113_v26 }
 0x100   :  { %716 = vst [vmem:[#allocation2 + $0x188] sm:$0xff] %v588_v32  ;;  %v636_v32 = vadd.f32 %v462_v48, %v316_v61  ;;  %v269_v61 = vmul.f32 %v1144_v58, %v1113_v26 }
 0x101   :  { %779 = vst [vmem:[#allocation2 + $0x380] sm:$0xff] %v651_v36  ;;  %v343_v36 = vmul.f32 %v1170_v35, %v1117_v28  ;;  %v324_v35 = vmul.f32 %v1056_v3, %v1119_v29 }
 0x102   :  { %780 = vst [vmem:[#allocation2 + $0x388] sm:$0xff] %v652_v5  ;;  %v600_v5 = vadd.f32 %v532_v31, %v280_v34 }
 0x103   :  { %695 = vst [vmem:[#allocation2 + $0xe0] sm:$0xff] %v567_v39  ;;  %v663_v39 = vadd.f32 %v532_v31, %v343_v36 }
 0x104   :  { %696 = vst [vmem:[#allocation2 + $0xe8] sm:$0xff] %v568_v43  ;;  %v664_v43 = vadd.f32 %v532_v31, %v344_v16  ;;  %v270_v31 = vmul.f32 %v1144_v58, %v1115_v27 }
 0x105   :  { %759 = vst [vmem:[#allocation2 + $0x2e0] sm:$0xff] %v631_v46  ;;  %v492_v44 = vpop.permute.xlu0 %491  ;;  %v323_v46 = vmul.f32 %v1056_v3, %v1117_v28  ;;  %v497_v48 = vpop.permute.xlu1 %496  ;;  %v322_v3 = vmul.f32 %v1109_v24, %v1119_v29  ;;  %v330_v24 = vmul.f32 %v1071_v9, %v1119_v29 }
 0x106   :  { %760 = vst [vmem:[#allocation2 + $0x2e8] sm:$0xff] %v632_v47  ;;  %v580_v47 = vadd.f32 %v482_v21, %v260_v59  ;;  %v341_v59 = vmul.f32 %v1107_v23, %v1117_v28 }
 0x107   :  { %693 = vst [vmem:[#allocation2 + $0xd0] sm:$0xff] %v565_v52  ;;  %v643_v52 = vadd.f32 %v482_v21, %v323_v46  ;;  %v642_v1 = vadd.f32 %v477_v49, %v322_v3  ;;  %v650_v37 = vadd.f32 %v497_v48, %v330_v24  ;;  %v275_v46 = vmul.f32 %v1156_v13, %v1113_v26 }
 0x108   :  { %694 = vst [vmem:[#allocation2 + $0xd8] sm:$0xff] %v566_v62  ;;  %v644_v62 = vadd.f32 %v482_v21, %v324_v35  ;;  %v335_v21 = vmul.f32 %v1086_v15, %v1117_v28  ;;  %v276_v35 = vmul.f32 %v1156_v13, %v1115_v27  ;;  %v282_v3 = vmul.f32 %v1168_v33, %v1115_v27 }
 0x109   :  { %757 = vst [vmem:[#allocation2 + $0x2d0] sm:$0xff] %v629_v41  ;;  %v265_v41 = vmul.f32 %v1071_v9, %v1113_v26 }
 0x10a   :  { %758 = vst [vmem:[#allocation2 + $0x2d8] sm:$0xff] %v630_v0  ;;  %v266_v0 = vmul.f32 %v1071_v9, %v1115_v27 }
 0x10b   :  { %721 = vst [vmem:[#allocation2 + $0x1b0] sm:$0xff] %v593_v56  ;;  %v329_v56 = vmul.f32 %v1071_v9, %v1117_v28  ;;  %v585_v10 = vadd.f32 %v497_v48, %v265_v41  ;;  %v328_v9 = vmul.f32 %v1132_v40, %v1119_v29 }
 0x10c   :  { %722 = vst [vmem:[#allocation2 + $0x1b8] sm:$0xff] %v594_v42  ;;  %v586_v42 = vadd.f32 %v497_v48, %v266_v0 }
 0x10d   :  { %785 = vst [vmem:[#allocation2 + $0x3b0] sm:$0xff] %v657_v6  ;;  %v507_v2 = vpop.permute.xlu0 %506  ;;  %v263_v6 = vmul.f32 %v1132_v40, %v1113_v26  ;;  %v649_v7 = vadd.f32 %v497_v48, %v329_v56  ;;  %v339_v48 = vmul.f32 %v1156_v13, %v1117_v28 }
 0x10e   :  { %786 = vst [vmem:[#allocation2 + $0x3b8] sm:$0xff] %v658_v8  ;;  %v264_v8 = vmul.f32 %v1132_v40, %v1115_v27  ;;  %v336_v40 = vmul.f32 %v1086_v15, %v1119_v29  ;;  %v589_v34 = vadd.f32 %v507_v2, %v269_v61  ;;  %v334_v15 = vmul.f32 %v1144_v58, %v1119_v29 }
 0x10f   :  { %701 = vst [vmem:[#allocation2 + $0x110] sm:$0xff] %v573_v12  ;;  %v512_v12 = vpop.permute.xlu1 %511  ;;  %v590_v36 = vadd.f32 %v507_v2, %v270_v31 }
 0x110   :  { %702 = vst [vmem:[#allocation2 + $0x118] sm:$0xff] %v574_v50  ;;  %v583_v50 = vadd.f32 %v492_v44, %v263_v6  ;;  %v584_v49 = vadd.f32 %v492_v44, %v264_v8  ;;  %v591_v22 = vadd.f32 %v512_v12, %v271_v18  ;;  %v654_v45 = vadd.f32 %v507_v2, %v334_v15 }
 0x111   :  { %765 = vst [vmem:[#allocation2 + $0x310] sm:$0xff] %v637_v19  ;;  %v647_v19 = vadd.f32 %v492_v44, %v327_v14 }
 0x112   :  { %766 = vst [vmem:[#allocation2 + $0x318] sm:$0xff] %v638_v63  ;;  %v648_v63 = vadd.f32 %v492_v44, %v328_v9 }
 0x113   :  { %699 = vst [vmem:[#allocation2 + $0x100] sm:$0xff] %v571_v30  ;;  %v592_v30 = vadd.f32 %v512_v12, %v272_v20 }
 0x114   :  { %700 = vst [vmem:[#allocation2 + $0x108] sm:$0xff] %v572_v25  ;;  %v655_v25 = vadd.f32 %v512_v12, %v335_v21 }
 0x115   :  { %763 = vst [vmem:[#allocation2 + $0x300] sm:$0xff] %v635_v4  ;;  %v656_v4 = vadd.f32 %v512_v12, %v336_v40  ;;  %v522_v57 = vpop.permute.xlu0 %521 }
 0x116   :  { %764 = vst [vmem:[#allocation2 + $0x308] sm:$0xff] %v636_v32  ;;  %v333_v32 = vmul.f32 %v1144_v58, %v1117_v28  ;;  %v342_v58 = vmul.f32 %v1107_v23, %v1119_v29  ;;  %v595_v51 = vadd.f32 %v522_v57, %v275_v46 }
 0x117   :  { %727 = vst [vmem:[#allocation2 + $0x1e0] sm:$0xff] %v599_v38  ;;  %v527_v38 = vpop.permute.xlu1 %526 }
 0x118   :  { %728 = vst [vmem:[#allocation2 + $0x1e8] sm:$0xff] %v600_v5  ;;  %v653_v16 = vadd.f32 %v507_v2, %v333_v32  ;;  %v277_v5 = vmul.f32 %v1107_v23, %v1113_v26 }
 0x119   :  { %791 = vst [vmem:[#allocation2 + $0x3e0] sm:$0xff] %v663_v39  ;;  %v278_v39 = vmul.f32 %v1107_v23, %v1115_v27  ;;  %v596_v23 = vadd.f32 %v522_v57, %v276_v35 }
 0x11a   :  { %792 = vst [vmem:[#allocation2 + $0x3e8] sm:$0xff] %v664_v43  ;;  %v597_v43 = vadd.f32 %v527_v38, %v277_v5 }
 0x11b   :  { %707 = vst [vmem:[#allocation2 + $0x140] sm:$0xff] %v579_v17  ;;  %v598_v44 = vadd.f32 %v527_v38, %v278_v39  ;;  %v661_v17 = vadd.f32 %v527_v38, %v341_v59 }
 0x11c   :  { %708 = vst [vmem:[#allocation2 + $0x148] sm:$0xff] %v580_v47  ;;  %v662_v47 = vadd.f32 %v527_v38, %v342_v58 }
 0x11d   :  { %771 = vst [vmem:[#allocation2 + $0x340] sm:$0xff] %v643_v52  ;;  %v340_v52 = vmul.f32 %v1156_v13, %v1119_v29  ;;  %v537_v55 = vpop.permute.xlu0 %536  ;;  %v346_v13 = vmul.f32 %v1168_v33, %v1119_v29 }
 0x11e   :  { %772 = vst [vmem:[#allocation2 + $0x348] sm:$0xff] %v644_v62  ;;  %v659_v62 = vadd.f32 %v522_v57, %v339_v48  ;;  %v601_v41 = vadd.f32 %v537_v55, %v281_v53 }
 0x11f   :  { %705 = vst [vmem:[#allocation2 + $0x130] sm:$0xff] %v577_v54  ;;  %v660_v54 = vadd.f32 %v522_v57, %v340_v52  ;;  %v666_v27 = vadd.f32 %v537_v55, %v346_v13 }
 0x120   :  { %706 = vst [vmem:[#allocation2 + $0x138] sm:$0xff] %v578_v60  ;;  %v345_v60 = vmul.f32 %v1168_v33, %v1117_v28 }
 0x121   :  { %769 = vst [vmem:[#allocation2 + $0x330] sm:$0xff] %v641_v11  ;;  %v602_v11 = vadd.f32 %v537_v55, %v282_v3 }
 0x122   :  { %770 = vst [vmem:[#allocation2 + $0x338] sm:$0xff] %v642_v1  ;;  %v665_v26 = vadd.f32 %v537_v55, %v345_v60 }
 0x123   :  { %713 = vst [vmem:[#allocation2 + $0x170] sm:$0xff] %v585_v10 }
 0x124   :  { %714 = vst [vmem:[#allocation2 + $0x178] sm:$0xff] %v586_v42 }
 0x125   :  { %777 = vst [vmem:[#allocation2 + $0x370] sm:$0xff] %v649_v7 }
 0x126   :  { %778 = vst [vmem:[#allocation2 + $0x378] sm:$0xff] %v650_v37 }
 0x127   :  { %711 = vst [vmem:[#allocation2 + $0x160] sm:$0xff] %v583_v50 }
 0x128   :  { %712 = vst [vmem:[#allocation2 + $0x168] sm:$0xff] %v584_v49 }
 0x129   :  { %775 = vst [vmem:[#allocation2 + $0x360] sm:$0xff] %v647_v19 }
 0x12a   :  { %776 = vst [vmem:[#allocation2 + $0x368] sm:$0xff] %v648_v63 }
 0x12b   :  { %719 = vst [vmem:[#allocation2 + $0x1a0] sm:$0xff] %v591_v22 }
 0x12c   :  { %720 = vst [vmem:[#allocation2 + $0x1a8] sm:$0xff] %v592_v30 }
 0x12d   :  { %783 = vst [vmem:[#allocation2 + $0x3a0] sm:$0xff] %v655_v25 }
 0x12e   :  { %784 = vst [vmem:[#allocation2 + $0x3a8] sm:$0xff] %v656_v4 }
 0x12f   :  { %717 = vst [vmem:[#allocation2 + $0x190] sm:$0xff] %v589_v34 }
 0x130   :  { %718 = vst [vmem:[#allocation2 + $0x198] sm:$0xff] %v590_v36 }
 0x131   :  { %781 = vst [vmem:[#allocation2 + $0x390] sm:$0xff] %v653_v16 }
 0x132   :  { %782 = vst [vmem:[#allocation2 + $0x398] sm:$0xff] %v654_v45 }
 0x133   :  { %725 = vst [vmem:[#allocation2 + $0x1d0] sm:$0xff] %v597_v43 }
 0x134   :  { %726 = vst [vmem:[#allocation2 + $0x1d8] sm:$0xff] %v598_v44 }
 0x135   :  { %789 = vst [vmem:[#allocation2 + $0x3d0] sm:$0xff] %v661_v17 }
 0x136   :  { %790 = vst [vmem:[#allocation2 + $0x3d8] sm:$0xff] %v662_v47 }
 0x137   :  { %723 = vst [vmem:[#allocation2 + $0x1c0] sm:$0xff] %v595_v51 }
 0x138   :  { %724 = vst [vmem:[#allocation2 + $0x1c8] sm:$0xff] %v596_v23 }
 0x139   :  { %787 = vst [vmem:[#allocation2 + $0x3c0] sm:$0xff] %v659_v62 }
 0x13a   :  { %788 = vst [vmem:[#allocation2 + $0x3c8] sm:$0xff] %v660_v54 }
 0x13b   :  { %729 = vst [vmem:[#allocation2 + $0x1f0] sm:$0xff] %v601_v41 }
 0x13c   :  { %730 = vst [vmem:[#allocation2 + $0x1f8] sm:$0xff] %v602_v11 }
 0x13d   :  { %793 = vst [vmem:[#allocation2 + $0x3f0] sm:$0xff] %v665_v26 }
 0x13e   :  { %794 = vst [vmem:[#allocation2 + $0x3f8] sm:$0xff] %v666_v27 }
 0x13f   :  { %807 = dma.vmem_to_hbm [thread:$0]  %s800_s2, 16384, %s802_s8, [#allocation3], %s848_s9, %s848_s9, %s849_s10  }
 0x140   :  { %844 = dma.done.wait [#allocation3], 16384  }
 0x141   :  { %845 = vsyncadd [#allocation3], 4294950912 }
 0x142   :  { %812 = vsyncpa [#allocation3], 1 }

</bundles_post_ra>
